<compile_context>
chip_gen: v5e
topology: v5e:2x2
jax: 0.10.0
libtpu: 0.0.40
codegen_flags: <defaults>
</compile_context>

<pallas_src>
import functools

import jax
import jax.numpy as jnp
from jax.experimental import pallas as pl
from jax.experimental.pallas import tpu as pltpu


# --------------------------------------------------------------------------
# helpers
# --------------------------------------------------------------------------
def _round_up(x, m):
    return (x + m - 1) // m * m


def _choose_tile(padded_dim, max_tile, align):
    """Largest tile <= max_tile that divides padded_dim (padded_dim % align == 0)."""
    if padded_dim <= max_tile:
        return padded_dim
    t = (max_tile // align) * align
    while t > align and padded_dim % t != 0:
        t -= align
    return t


# --------------------------------------------------------------------------
# Pallas kernels
# --------------------------------------------------------------------------
def _gemm_bias_act_kernel(p_ref, w_ref, b_ref, o_ref, acc_ref, *, act):
    """Tiled GEMM with K-accumulation; bias + ELU fused into the finalize."""
    k = pl.program_id(2)

    @pl.when(k == 0)
    def _():
        acc_ref[...] = jnp.zeros_like(acc_ref)

    acc_ref[...] += jnp.dot(p_ref[...], w_ref[...],
                            preferred_element_type=jnp.float32)

    @pl.when(k == pl.num_programs(2) - 1)
    def _():
        out = acc_ref[...] + b_ref[...]
        if act == "elu":
            # (exp(x)-1 on the negative branch; expm1 would be marginally more
            # accurate but exp is the guaranteed-supported EUP lowering.)
            neg = jnp.exp(jnp.minimum(out, 0.0)) - 1.0
            out = jnp.where(out > 0.0, out, neg)
        o_ref[...] = out


def _gemm_bias_act(patches, wmat, bias, act):
    """act(patches @ wmat + bias) with bf16 MXU inputs and f32 accumulation."""
    M, K = patches.shape
    K2, N = wmat.shape
    assert K == K2

    Mp = _round_up(M, 16)
    Kp = _round_up(K, 128)
    Np = _round_up(N, 128)
    tm = _choose_tile(Mp, 256, 16)
    tk = _choose_tile(Kp, 512, 128)
    tn = _choose_tile(Np, 256, 128)

    p = jnp.pad(patches.astype(jnp.bfloat16), ((0, Mp - M), (0, Kp - K)))
    w = jnp.pad(wmat.astype(jnp.bfloat16), ((0, Kp - K), (0, Np - N)))
    b = jnp.pad(bias.astype(jnp.float32), (0, Np - N)).reshape(1, Np)

    grid = (Mp // tm, Np // tn, Kp // tk)

    out = pl.pallas_call(
        functools.partial(_gemm_bias_act_kernel, act=act),
        out_shape=jax.ShapeDtypeStruct((Mp, Np), jnp.float32),
        grid_spec=pltpu.PrefetchScalarGridSpec(
            num_scalar_prefetch=0,
            grid=grid,
            in_specs=[
                pl.BlockSpec((tm, tk), lambda i, j, k: (i, k)),
                pl.BlockSpec((tk, tn), lambda i, j, k: (k, j)),
                pl.BlockSpec((1, tn), lambda i, j, k: (0, j)),
            ],
            out_specs=pl.BlockSpec((tm, tn), lambda i, j, k: (i, j)),
            scratch_shapes=[pltpu.VMEM((tm, tn), jnp.float32)],
        ),
        compiler_params=pltpu.CompilerParams(
            dimension_semantics=("parallel", "parallel", "arbitrary"),
            vmem_limit_bytes=32 * 1024 * 1024,
        ),
    )(p, w, b)
    return out[:M, :N]


def _ctx_norm_kernel(x_ref, m_ref, o_ref, *, alpha, eps, total):
    """Context normalization on a (tc, L) channel block with mask (1, L).

    Matches the PyTorch reference exactly:
      cnt_k = max(eps, sum(mask));  per-channel mean/var of x*mask summed over
      ALL `total` positions, divided by cnt_k (one-pass moment form).
      bn    = (x*(1-mask) - mean_u)/sqrt(var_u+eps)*sqrt(var_k) + mean_k
      out   = (alpha*bn + (1-alpha)*x*(1-mask))*(1-mask) + x*mask
    """
    x = x_ref[...]               # (tc, L) f32
    m = m_ref[...]               # (1, L)  "known" mask
    mrev = 1.0 - m

    cnt_k = jnp.maximum(eps, jnp.sum(m))
    cnt_u = jnp.maximum(eps, jnp.sum(mrev))

    xk = x * m
    xu = x * mrev

    sk = jnp.sum(xk, axis=1, keepdims=True)
    sk2 = jnp.sum(xk * xk, axis=1, keepdims=True)
    su = jnp.sum(xu, axis=1, keepdims=True)
    su2 = jnp.sum(xu * xu, axis=1, keepdims=True)

    mean_k = sk / cnt_k
    mean_u = su / cnt_u
    # One-pass moments:  sum_all (x*m - mean)^2 = sum(xm^2) - 2*mean*sum(xm) + L*mean^2
    var_k = jnp.maximum((sk2 - 2.0 * mean_k * sk + total * mean_k * mean_k) / cnt_k, 0.0)
    var_u = jnp.maximum((su2 - 2.0 * mean_u * su + total * mean_u * mean_u) / cnt_u, 0.0)

    bn = (xu - mean_u) * jax.lax.rsqrt(var_u + eps) * jnp.sqrt(var_k) + mean_k
    x_unknown = alpha * bn + (1.0 - alpha) * xu
    o_ref[...] = x_unknown * mrev + x * m


# --------------------------------------------------------------------------
# Conv / resize / context-norm wrappers (glue + Pallas calls)
# --------------------------------------------------------------------------
def conv2d(x, w, b, stride=1, padding=0, dilation=1, act="elu"):
    """NCHW conv as im2col (bf16) + tiled Pallas GEMM.  w: (Cout, Cin, KH, KW)."""
    N, Cin, H, W = x.shape
    Cout, _, KH, KW = w.shape
    Ho = (H + 2 * padding - dilation * (KH - 1) - 1) // stride + 1
    Wo = (W + 2 * padding - dilation * (KW - 1) - 1) // stride + 1

    xp = jnp.pad(x.astype(jnp.bfloat16),
                 ((0, 0), (0, 0), (padding, padding), (padding, padding)))
    cols = []
    for kh in range(KH):
        for kw in range(KW):
            sl = xp[
                :, :,
                kh * dilation: kh * dilation + (Ho - 1) * stride + 1: stride,
                kw * dilation: kw * dilation + (Wo - 1) * stride + 1: stride,
            ]  # (N, Cin, Ho, Wo)
            cols.append(sl)
    patches = jnp.stack(cols, axis=0)                       # (KH*KW, N, Cin, Ho, Wo)
    patches = patches.transpose(1, 3, 4, 0, 2).reshape(N * Ho * Wo, KH * KW * Cin)
    wmat = jnp.transpose(w.astype(jnp.bfloat16), (2, 3, 1, 0)).reshape(KH * KW * Cin, Cout)

    out = _gemm_bias_act(patches, wmat, b, act)             # (N*Ho*Wo, Cout) f32
    return out.reshape(N, Ho, Wo, Cout).transpose(0, 3, 1, 2)


def nearest_resize(x, size):
    """F.interpolate(x, size, mode='nearest') for NCHW."""
    N, C, H, W = x.shape
    th, tw = size
    ridx = (jnp.arange(th) * H) // th
    cidx = (jnp.arange(tw) * W) // tw
    x = jnp.take(x, ridx, axis=2)
    x = jnp.take(x, cidx, axis=3)
    return x


def context_normalization(x, mask, alpha=0.5, eps=1e-5):
    N, C, H, W = x.shape
    mask_s = nearest_resize(1.0 - mask[:, :1, :, :], (H, W))   # (N,1,H,W) "known"
    L = N * H * W
    xt = jnp.transpose(x, (1, 0, 2, 3)).reshape(C, L)
    mt = jnp.transpose(mask_s, (1, 0, 2, 3)).reshape(1, L)

    Cp = _round_up(C, 8)
    tc = 128 if Cp % 128 == 0 else Cp          # tile C so the 2 TCs (v7x) can split it
    xt = jnp.pad(xt, ((0, Cp - C), (0, 0)))

    out = pl.pallas_call(
        functools.partial(_ctx_norm_kernel, alpha=alpha, eps=eps, total=float(L)),
        out_shape=jax.ShapeDtypeStruct((Cp, L), jnp.float32),
        grid=(Cp // tc,),
        in_specs=[
            pl.BlockSpec((tc, L), lambda i: (i, 0)),
            pl.BlockSpec((1, L), lambda i: (0, 0)),
        ],
        out_specs=pl.BlockSpec((tc, L), lambda i: (i, 0)),
        compiler_params=pltpu.CompilerParams(
            dimension_semantics=("parallel",),
            vmem_limit_bytes=32 * 1024 * 1024,
        ),
    )(xt, mt)
    return jnp.transpose(out[:C].reshape(C, N, H, W), (1, 0, 2, 3))


# --------------------------------------------------------------------------
# Parameter construction (deterministic, matches module shapes)
# --------------------------------------------------------------------------
ENC_F = [5, 4, 3, 4, 3, 3]
ENC_S = [1, 2, 1, 2, 1, 1]
ENC_P = [2, 1, 1, 1, 1, 1]


def _make_conv(key, cout, cin, kh, kw):
    kw_key, kb_key = jax.random.split(key)
    fan_in = cin * kh * kw
    w = jax.random.normal(kw_key, (cout, cin, kh, kw), jnp.float32) * (0.5 / jnp.sqrt(fan_in))
    b = jax.random.normal(kb_key, (cout,), jnp.float32) * 0.01
    return w, b


def init_generator_params(key, cnum):
    keys = iter(jax.random.split(key, 64))
    params = {}

    encC = [3, cnum, 2 * cnum, 2 * cnum, 4 * cnum, 4 * cnum, 4 * cnum]
    params["Ge"] = [_make_conv(next(keys), encC[i + 1], encC[i], ENC_F[i], ENC_F[i])
                    for i in range(len(encC) - 1)]
    params["Gb"] = [_make_conv(next(keys), 4 * cnum, 4 * cnum, 3, 3) for _ in range(1, 5)]
    decC = encC[::-1]
    params["Gd"] = [_make_conv(next(keys), decC[i + 1], decC[i], 3, 3)
                    for i in range(len(decC) - 2)]
    params["subpixel"] = _make_conv(next(keys), 4 * cnum, cnum, 3, 3)

    # PyTorch hard-codes 68 input channels here (= cnum + 4 with cnum = 64).
    encC2 = [cnum + 4, cnum, cnum, 2 * cnum, 2 * cnum, 4 * cnum, 4 * cnum]
    params["Ge2"] = [_make_conv(next(keys), encC2[i + 1], encC2[i], ENC_F[i], ENC_F[i])
                     for i in range(len(encC2) - 1)]
    params["Gb2"] = [_make_conv(next(keys), 4 * cnum, 4 * cnum, 3, 3) for _ in range(1, 5)]
    decC2 = [4 * cnum] + encC2[::-1]
    decC2[-2] = cnum // 2
    decC2[-1] = 3
    params["Gd2"] = [_make_conv(next(keys), decC2[i + 1], decC2[i], 3, 3)
                     for i in range(len(decC2) - 1)]
    return params


# --------------------------------------------------------------------------
# Forward pass (mirrors build_generator.forward)
# --------------------------------------------------------------------------
def _FEN(params, x):
    x_ = x
    for i, (w, b) in enumerate(params["Ge"]):
        x_ = conv2d(x_, w, b, stride=ENC_S[i], padding=ENC_P[i], dilation=1, act="elu")
    for i, (w, b) in enumerate(params["Gb"]):
        d = 2 ** (i + 1)
        x_ = conv2d(x_, w, b, stride=1, padding=d, dilation=d, act="elu")
    for i, (w, b) in enumerate(params["Gd"]):
        if i in (2, 4):
            x_ = nearest_resize(x_, (x_.shape[2] * 2, x_.shape[3] * 2))
        x_ = conv2d(x_, w, b, stride=1, padding=1, dilation=1, act="elu")
        if i == 4:
            break
    return x_


def _subpixel_conv(params, x, target_size):
    th, tw = target_size
    sw, sb = params["subpixel"]
    x = conv2d(x, sw, sb, stride=1, padding=1, dilation=1, act=None)   # no activation
    b, c, h, w = x.shape
    # PyTorch .view on a contiguous NCHW tensor == plain reshape (NOT PixelShuffle).
    return x.reshape(b, c // ((th // h) * (tw // w)), th, tw)


def _CPN(params, x_fe, x_in, mask):
    ones_x = jnp.ones_like(x_in[:, :1, :, :])
    xnow = jnp.concatenate([x_fe, x_in, mask * ones_x], axis=1)
    x_ = xnow
    for i, (w, b) in enumerate(params["Ge2"]):
        x_ = conv2d(x_, w, b, stride=ENC_S[i], padding=ENC_P[i], dilation=1, act="elu")
    for i, (w, b) in enumerate(params["Gb2"]):
        d = 2 ** (i + 1)
        x_ = conv2d(x_, w, b, stride=1, padding=d, dilation=d, act="elu")
    for i, (w, b) in enumerate(params["Gd2"]):
        if i == 1:
            x_ = context_normalization(x_, mask, alpha=0.5, eps=1e-5)
        if i in (2, 4):
            x_ = nearest_resize(x_, (x_.shape[2] * 2, x_.shape[3] * 2))
        x_ = conv2d(x_, w, b, stride=1, padding=1, dilation=1, act="elu")
    return jnp.clip(x_, -1.0, 1.0)


def generator_forward(params, x, mask, margin):
    """x: (N,3,H,W), mask: (N,1,TH,TW), margin: dict(left,right,top,bottom)."""
    TH, TW = int(mask.shape[2]), int(mask.shape[3])
    xin_expanded = jnp.pad(
        x,
        ((0, 0), (0, 0),
         (margin["top"], margin["bottom"]),
         (margin["left"], margin["right"])),
    ).reshape(-1, 3, TH, TW)

    x_ = _FEN(params, x)
    x_fe = _subpixel_conv(params, x_, (TH, TW))
    x_out = _CPN(params, x_fe, xin_expanded, mask)
    return x_out, x_fe


# --------------------------------------------------------------------------
# Main
# --------------------------------------------------------------------------
if __name__ == "__main__":
    key = jax.random.PRNGKey(0)
    kp, kx, km = jax.random.split(key, 3)

    cnum = 64                     # the module hard-codes 68 = cnum + 4 -> cnum must be 64
    N, H, W = 2, 8, 8             # small input image
    TH, TW = 16, 16               # mask / target spatial size (expand ratio = 4)
    margin = dict(left=4, right=4, top=4, bottom=4)

    params = init_generator_params(kp, cnum)
    x = jax.random.normal(kx, (N, 3, H, W), jnp.float32)
    mask = (jax.random.uniform(km, (N, 1, TH, TW)) > 0.5).astype(jnp.float32)

    x_out, x_fe = generator_forward(params, x, mask, margin)
    jax.block_until_ready((x_out, x_fe))

    assert x_out.shape == (N, 3, TH, TW), x_out.shape
    assert x_fe.shape == (N, cnum, TH, TW), x_fe.shape
    assert jnp.all(jnp.isfinite(x_out)) and jnp.all(jnp.isfinite(x_fe))
    print("KERNEL_OK")
</pallas_src>

<mosaic_0001>
module attributes {stable_mosaic.version = 11 : i64} {
  func.func @_gemm_bias_act_kernel(%arg0: i32, %arg1: i32, %arg2: i32, %arg3: memref<128x128xbf16, #tpu.memory_space<vmem>>, %arg4: memref<128x128xbf16, #tpu.memory_space<vmem>>, %arg5: memref<1x128xf32, #tpu.memory_space<vmem>>, %arg6: memref<128x128xf32, #tpu.memory_space<vmem>>, %arg7: memref<128x128xf32, #tpu.memory_space<vmem>>) attributes {dimension_semantics = [#tpu.dimension_semantics<parallel>, #tpu.dimension_semantics<parallel>, #tpu.dimension_semantics<arbitrary>], iteration_bounds = array<i64: 1, 1, 1>, scalar_prefetch = 0 : i64, scratch_operands = 1 : i64, tpu.core_type = #tpu.core_type<tc>, window_params = [{transform_indices = @transform_0, window_bounds = array<i64: 128, 128>}, {transform_indices = @transform_1, window_bounds = array<i64: 128, 128>}, {transform_indices = @transform_2, window_bounds = array<i64: 1, 128>}, {transform_indices = @transform_3, window_bounds = array<i64: 128, 128>}]} {
    %c0_i32 = arith.constant 0 : i32
    %0 = arith.cmpi eq, %arg2, %c0_i32 : i32
    %1 = arith.extui %0 : i1 to i32
    %c0_i32_0 = arith.constant 0 : i32
    %2 = arith.cmpi ne, %1, %c0_i32_0 : i32
    scf.if %2 {
      %cst_10 = arith.constant 0.000000e+00 : f32
      %12 = vector.broadcast %cst_10 : f32 to vector<128x128xf32>
      %c0_11 = arith.constant 0 : index
      %c0_12 = arith.constant 0 : index
      %13 = vector.load %arg7[%c0_11, %c0_12] : memref<128x128xf32, #tpu.memory_space<vmem>>, vector<128x128xf32>
      tpu.vector_store %arg7[%c0_11, %c0_12], %12 {strides = array<i32>} : memref<128x128xf32, #tpu.memory_space<vmem>>, vector<128x128xf32>,
    } else {
    }
    %c0 = arith.constant 0 : index
    %c0_1 = arith.constant 0 : index
    %3 = vector.load %arg7[%c0, %c0_1] : memref<128x128xf32, #tpu.memory_space<vmem>>, vector<128x128xf32>
    %c0_2 = arith.constant 0 : index
    %c0_3 = arith.constant 0 : index
    %4 = vector.load %arg3[%c0_2, %c0_3] : memref<128x128xbf16, #tpu.memory_space<vmem>>, vector<128x128xbf16>
    %c0_4 = arith.constant 0 : index
    %c0_5 = arith.constant 0 : index
    %5 = vector.load %arg4[%c0_4, %c0_5] : memref<128x128xbf16, #tpu.memory_space<vmem>>, vector<128x128xbf16>
    %cst = arith.constant dense<0.000000e+00> : vector<128x128xf32>
    %6 = tpu.matmul %4, %5, %cst {dimension_numbers = #tpu.dot_dimension_numbers<[1], [0], [0], [1], [0, 0, 1, 1], [], []>} : vector<128x128xbf16>, vector<128x128xbf16>, vector<128x128xf32> -> vector<128x128xf32>
    %7 = arith.addf %3, %6 : vector<128x128xf32>
    %c0_6 = arith.constant 0 : index
    %c0_7 = arith.constant 0 : index
    %8 = vector.load %arg7[%c0_6, %c0_7] : memref<128x128xf32, #tpu.memory_space<vmem>>, vector<128x128xf32>
    tpu.vector_store %arg7[%c0_6, %c0_7], %7 {strides = array<i32>} : memref<128x128xf32, #tpu.memory_space<vmem>>, vector<128x128xf32>,
    %c0_i32_8 = arith.constant 0 : i32
    %9 = arith.cmpi eq, %arg2, %c0_i32_8 : i32
    %10 = arith.extui %9 : i1 to i32
    %c0_i32_9 = arith.constant 0 : i32
    %11 = arith.cmpi ne, %10, %c0_i32_9 : i32
    scf.if %11 {
      %c0_10 = arith.constant 0 : index
      %c0_11 = arith.constant 0 : index
      %12 = vector.load %arg7[%c0_10, %c0_11] : memref<128x128xf32, #tpu.memory_space<vmem>>, vector<128x128xf32>
      %c0_12 = arith.constant 0 : index
      %c0_13 = arith.constant 0 : index
      %13 = vector.load %arg5[%c0_12, %c0_13] : memref<1x128xf32, #tpu.memory_space<vmem>>, vector<1x128xf32>
      %14 = vector.broadcast %13 : vector<1x128xf32> to vector<128x128xf32>
      %15 = arith.addf %12, %14 : vector<128x128xf32>
      %cst_14 = arith.constant 0.000000e+00 : f32
      %16 = vector.broadcast %cst_14 : f32 to vector<128x128xf32>
      %17 = arith.minimumf %15, %16 : vector<128x128xf32>
      %18 = math.exp %17 : vector<128x128xf32>
      %cst_15 = arith.constant 1.000000e+00 : f32
      %19 = vector.broadcast %cst_15 : f32 to vector<128x128xf32>
      %20 = arith.subf %18, %19 : vector<128x128xf32>
      %cst_16 = arith.constant 0.000000e+00 : f32
      %21 = vector.broadcast %cst_16 : f32 to vector<128x128xf32>
      %22 = arith.cmpf ogt, %15, %21 : vector<128x128xf32>
      %23 = arith.select %22, %15, %20 : vector<128x128xi1>, vector<128x128xf32>
      %c0_17 = arith.constant 0 : index
      %c0_18 = arith.constant 0 : index
      %24 = vector.load %arg6[%c0_17, %c0_18] : memref<128x128xf32, #tpu.memory_space<vmem>>, vector<128x128xf32>
      tpu.vector_store %arg6[%c0_17, %c0_18], %23 {strides = array<i32>} : memref<128x128xf32, #tpu.memory_space<vmem>>, vector<128x128xf32>,
    } else {
    }
    return
  }
  func.func @transform_0(%arg0: i32, %arg1: i32, %arg2: i32) -> (i32, i32) {
    %c0_i32 = arith.constant 0 : i32
    return %arg0, %arg2 : i32, i32
  }
  func.func @transform_1(%arg0: i32, %arg1: i32, %arg2: i32) -> (i32, i32) {
    %c0_i32 = arith.constant 0 : i32
    return %arg2, %arg1 : i32, i32
  }
  func.func @transform_2(%arg0: i32, %arg1: i32, %arg2: i32) -> (i32, i32) {
    %c0_i32 = arith.constant 0 : i32
    %c0_i32_0 = arith.constant 0 : i32
    return %c0_i32, %arg1 : i32, i32
  }
  func.func @transform_3(%arg0: i32, %arg1: i32, %arg2: i32) -> (i32, i32) {
    %c0_i32 = arith.constant 0 : i32
    return %arg0, %arg1 : i32, i32
  }
}

</mosaic_0001>

<bundles_post_ra>
// kernel: tpu_custom_call.1
= control target key start
LH: loop header
LB: loop body
LE: loop exit
PB: predicated region body
PF: predicated region fallthrough
CT: control target
= control target key end

     0   :  { %8 = vsyncpa [#allocation4], 0  ;;  %s797_s0 = inlined_call_operand.hbm [shape: bf16[128,128], index: 0, kind: input, shape index: {}]   ;;  %s798_s1 = inlined_call_operand.hbm [shape: bf16[128,128], index: 1, kind: input, shape index: {}]   ;;  %s799_s2 = inlined_call_operand.vmem [shape: f32[1,128], index: 2, kind: input, shape index: {}]   ;;  %s800_s3 = inlined_call_operand.hbm [shape: f32[128,128], index: 3, kind: output, shape index: {}]  }
   0x1   :  { %9 = vsyncpa [#allocation7], 0 }
   0x2   :  { %10 = vsyncpa [#allocation5], 0  ;;  %s15_s14 = sshll.u32 %s797_s0, 4  ;;  %s701_s15 = smov [#allocation3]   ;;  %s16_s14 = int_to_ptr.hbm [resolvable:$true] %s15_s14 }
   0x3   :  { %s17_s16 = sshll.u32 %s701_s15, 4  ;;  %s28_s19 = sshll.u32 %s798_s1, 4  ;;  %s18_s16 = int_to_ptr.vmem [resolvable:$true] %s17_s16  ;;  %s29_s19 = int_to_ptr.hbm [resolvable:$true] %s28_s19 }
   0x4   :  { %s702_s20 = smov 64   ;;  %s703_s21 = smov 4  }
   0x5   :  { %23 = dma.hbm_to_vmem [thread:$0]  %s16_s14, 1024, %s18_s16, [#allocation4], %s702_s20, %s702_s20, %s703_s21  }
   0x6   :  { %s704_s22 = smov [#allocation6]  }
   0x7   :  { %s30_s23 = sshll.u32 %s704_s22, 4  ;;  %s31_s23 = int_to_ptr.vmem [resolvable:$true] %s30_s23 }
   0x8   :  { %36 = dma.hbm_to_vmem [thread:$0]  %s29_s19, 1024, %s31_s23, [#allocation7], %s702_s20, %s702_s20, %s703_s21  }
   0x9   :  { %695 = dma.done.wait [#allocation4], 1024  }
   0xa   :  { %696 = vsyncadd [#allocation4], 4294966272 }
   0xb   :  { %697 = dma.done.wait [#allocation7], 1024  }
   0xc   :  { %698 = vsyncadd [#allocation7], 4294966272  ;;  %v558_v0 = vld [vmem:[#allocation6 + $0x38] sm:$0xff]  ;;  %v557_v1 = vld [vmem:[#allocation6 + $0x30] sm:$0xff]  ;;  %s449_s27 = sshll.u32 %s800_s3, 4  ;;  %s706_s28 = smov 128   ;;  %s450_s27 = int_to_ptr.hbm [resolvable:$true] %s449_s27 }
   0xd   :  { %211 = vmatpush.bf16.msra.mxu0 %v558_v0  ;;  %559 = vmatpush.bf16.msra.mxu1 %v558_v0  ;;  %v556_v2 = vld [vmem:[#allocation6 + $0x28] sm:$0xff]  ;;  %v555_v3 = vld [vmem:[#allocation6 + $0x20] sm:$0xff]  ;;  %v554_v4 = vld [vmem:[#allocation6 + $0x18] sm:$0xff]  ;;  %s707_s29 = smov 8  }
   0xe   :  { %560 = vmatpush.bf16.msra.mxu2 %v558_v0  ;;  %561 = vmatpush.bf16.msra.mxu3 %v558_v0  ;;  %v553_v5 = vld [vmem:[#allocation6 + $0x10] sm:$0xff]  ;;  %v552_v6 = vld [vmem:[#allocation6 + $0x8] sm:$0xff]  ;;  %v551_v7 = vld [vmem:[#allocation6] sm:$0xff] }
   0xf   :  { %v543_v8 = vld [vmem:[#allocation3] sm:$0xff]  ;;  %v545_v9 = vld [vmem:[#allocation3 + $0x10] sm:$0xff]  ;;  %v544_v12 = vld [vmem:[#allocation3 + $0x8] sm:$0xff] }
  0x10   :  { %v547_v10 = vld [vmem:[#allocation3 + $0x20] sm:$0xff]  ;;  %v549_v11 = vld [vmem:[#allocation3 + $0x30] sm:$0xff]  ;;  %v546_v13 = vld [vmem:[#allocation3 + $0x18] sm:$0xff] }
  0x11   :  { %212 = vmatpush.bf16.msra.mxu0 %v557_v1  ;;  %562 = vmatpush.bf16.msra.mxu1 %v557_v1  ;;  %v548_v14 = vld [vmem:[#allocation3 + $0x28] sm:$0xff]  ;;  %v550_v15 = vld [vmem:[#allocation3 + $0x38] sm:$0xff]  ;;  %v737_v16 = vld [vmem:[%s799_s2] ss:$0 sm:$0xff]  ;;  %s705_s2 = smov [#allocation8]  }
  0x12   :  { %563 = vmatpush.bf16.msra.mxu2 %v557_v1  ;;  %564 = vmatpush.bf16.msra.mxu3 %v557_v1  ;;  %s447_s24 = sshll.u32 %s705_s2, 4  ;;  %s448_s24 = int_to_ptr.vmem [resolvable:$true] %s447_s24 }
  0x15   :  { %213 = vmatpush.bf16.msra.mxu0 %v556_v2  ;;  %565 = vmatpush.bf16.msra.mxu1 %v556_v2 }
  0x16   :  { %566 = vmatpush.bf16.msra.mxu2 %v556_v2  ;;  %567 = vmatpush.bf16.msra.mxu3 %v556_v2 }
  0x19   :  { %214 = vmatpush.bf16.msra.mxu0 %v555_v3  ;;  %568 = vmatpush.bf16.msra.mxu1 %v555_v3 }
  0x1a   :  { %569 = vmatpush.bf16.msra.mxu2 %v555_v3  ;;  %570 = vmatpush.bf16.msra.mxu3 %v555_v3 }
  0x1d   :  { %215 = vmatpush.bf16.msra.mxu0 %v554_v4  ;;  %571 = vmatpush.bf16.msra.mxu1 %v554_v4 }
  0x1e   :  { %572 = vmatpush.bf16.msra.mxu2 %v554_v4  ;;  %573 = vmatpush.bf16.msra.mxu3 %v554_v4 }
  0x21   :  { %216 = vmatpush.bf16.msra.mxu0 %v553_v5  ;;  %574 = vmatpush.bf16.msra.mxu1 %v553_v5 }
  0x22   :  { %575 = vmatpush.bf16.msra.mxu2 %v553_v5  ;;  %576 = vmatpush.bf16.msra.mxu3 %v553_v5 }
  0x25   :  { %217 = vmatpush.bf16.msra.mxu0 %v552_v6  ;;  %577 = vmatpush.bf16.msra.mxu1 %v552_v6 }
  0x26   :  { %578 = vmatpush.bf16.msra.mxu2 %v552_v6  ;;  %579 = vmatpush.bf16.msra.mxu3 %v552_v6 }
  0x29   :  { %218 = vmatpush.bf16.msra.mxu0 %v551_v7  ;;  %580 = vmatpush.bf16.msra.mxu1 %v551_v7 }
  0x2a   :  { %581 = vmatpush.bf16.msra.mxu2 %v551_v7  ;;  %582 = vmatpush.bf16.msra.mxu3 %v551_v7 }
  0x2c   :  { %219 = vmatmul.bf16.vlgmr.msra.gmra.mxu0 %v543_v8  ;;  %229 = vmatmul.bf16.vlgmr.msra.gmra.mxu1 %v545_v9 }
  0x2d   :  { %239 = vmatmul.bf16.vlgmr.msra.gmra.mxu2 %v547_v10  ;;  %249 = vmatmul.bf16.vlgmr.msra.gmra.mxu3 %v549_v11 }
  0x3c   :  { %224 = vmatmul.bf16.gmra.mxu0 %v544_v12  ;;  %234 = vmatmul.bf16.gmra.mxu1 %v546_v13 }
  0x3d   :  { %244 = vmatmul.bf16.gmra.mxu2 %v548_v14  ;;  %254 = vmatmul.bf16.gmra.mxu3 %v550_v15 }
  0xa9   :  { %v220_v17 = vpop.f32.mrf.mxu0  ;;  %v230_v18 = vpop.f32.mrf.mxu1 }
  0xaa   :  { %v315_v19 = vadd.f32 %v737_v16, %v220_v17  ;;  %v319_v20 = vadd.f32 %v737_v16, %v230_v18 }
  0xac   :  { %v331_v21 = vmin.f32 %v315_v19, 0.0  ;;  %v335_v22 = vmin.f32 %v319_v20, 0.0  ;;  %vm395_vm0 = vcmp.gt.f32.partialorder %v315_v19, 0.0  ;;  %vm399_vm1 = vcmp.gt.f32.partialorder %v319_v20, 0.0 }
  0xae   :  { %v347_v23 = vmul.f32 1.442695, %v331_v21  ;;  %v355_v24 = vmul.f32 1.442695, %v335_v22 }
  0xb0   :  { %591 = vpow2.f32 %v347_v23  ;;  %v240_v25 = vpop.f32.mrf.mxu2  ;;  %v250_v26 = vpop.f32.mrf.mxu3 }
  0xb1   :  { %593 = vpow2.f32 %v355_v24  ;;  %v323_v27 = vadd.f32 %v737_v16, %v240_v25  ;;  %v327_v28 = vadd.f32 %v737_v16, %v250_v26  ;;  %v222_v29 = vpop.f32.mrf.mxu0  ;;  %v232_v30 = vpop.f32.mrf.mxu1 }
  0xb2   :  { %v744_v31 = vadd.f32 %v737_v16, %v222_v29  ;;  %v747_v32 = vadd.f32 %v737_v16, %v232_v30 }
  0xb3   :  { %v339_v33 = vmin.f32 %v323_v27, 0.0  ;;  %v343_v34 = vmin.f32 %v327_v28, 0.0  ;;  %vm403_vm2 = vcmp.gt.f32.partialorder %v323_v27, 0.0  ;;  %vm407_vm3 = vcmp.gt.f32.partialorder %v327_v28, 0.0 }
  0xb4   :  { %v332_v35 = vmin.f32 %v744_v31, 0.0  ;;  %v336_v36 = vmin.f32 %v747_v32, 0.0  ;;  %vm396_vm4 = vcmp.gt.f32.partialorder %v744_v31, 0.0  ;;  %vm400_vm5 = vcmp.gt.f32.partialorder %v747_v32, 0.0 }
  0xb5   :  { %v363_v37 = vmul.f32 1.442695, %v339_v33  ;;  %v371_v38 = vmul.f32 1.442695, %v343_v34 }
  0xb6   :  { %v592_v39 = vpop.eup %591  ;;  %v349_v40 = vmul.f32 1.442695, %v332_v35  ;;  %v357_v41 = vmul.f32 1.442695, %v336_v36 }
  0xb7   :  { %v594_v42 = vpop.eup %593  ;;  %v527_v43 = vadd.f32 -1.0, %v592_v39  ;;  %595 = vpow2.f32 %v363_v37 }
  0xb8   :  { %v531_v44 = vadd.f32 -1.0, %v594_v42  ;;  %597 = vpow2.f32 %v371_v38  ;;  %v242_v45 = vpop.f32.mrf.mxu2  ;;  %v252_v46 = vpop.f32.mrf.mxu3 }
  0xb9   :  { %v411_v47 = vsel %vm395_vm0, %v315_v19, %v527_v43  ;;  %599 = vpow2.f32 %v349_v40  ;;  %v752_v48 = vadd.f32 %v737_v16, %v242_v45  ;;  %v755_v49 = vadd.f32 %v737_v16, %v252_v46  ;;  %v225_v50 = vpop.f32.mrf.mxu0  ;;  %v235_v51 = vpop.f32.mrf.mxu1 }
  0xba   :  { %427 = vst [vmem:[#allocation8] sm:$0xff] %v411_v47  ;;  %v415_v52 = vsel %vm399_vm1, %v319_v20, %v531_v44  ;;  %601 = vpow2.f32 %v357_v41  ;;  %v758_v53 = vadd.f32 %v737_v16, %v225_v50  ;;  %v761_v54 = vadd.f32 %v737_v16, %v235_v51 }
  0xbb   :  { %431 = vst [vmem:[#allocation8 + $0x20] sm:$0xff] %v415_v52  ;;  %v340_v55 = vmin.f32 %v752_v48, 0.0  ;;  %v344_v56 = vmin.f32 %v755_v49, 0.0  ;;  %vm404_vm6 = vcmp.gt.f32.partialorder %v752_v48, 0.0  ;;  %vm408_vm7 = vcmp.gt.f32.partialorder %v755_v49, 0.0 }
  0xbc   :  { %v333_v57 = vmin.f32 %v758_v53, 0.0  ;;  %v337_v58 = vmin.f32 %v761_v54, 0.0  ;;  %vm397_vm8 = vcmp.gt.f32.partialorder %v758_v53, 0.0  ;;  %vm401_vm9 = vcmp.gt.f32.partialorder %v761_v54, 0.0 }
  0xbd   :  { %v596_v59 = vpop.eup %595  ;;  %v365_v60 = vmul.f32 1.442695, %v340_v55  ;;  %v373_v61 = vmul.f32 1.442695, %v344_v56 }
  0xbe   :  { %v598_v62 = vpop.eup %597  ;;  %v535_v63 = vadd.f32 -1.0, %v596_v59  ;;  %v351_v0 = vmul.f32 1.442695, %v333_v57  ;;  %v359_v1 = vmul.f32 1.442695, %v337_v58 }
  0xbf   :  { %v600_v2 = vpop.eup %599  ;;  %v539_v3 = vadd.f32 -1.0, %v598_v62  ;;  %603 = vpow2.f32 %v365_v60 }
  0xc0   :  { %v602_v4 = vpop.eup %601  ;;  %v419_v5 = vsel %vm403_vm2, %v323_v27, %v535_v63  ;;  %v528_v6 = vadd.f32 -1.0, %v600_v2  ;;  %605 = vpow2.f32 %v373_v61  ;;  %v245_v7 = vpop.f32.mrf.mxu2 }
  0xc1   :  { %v255_v8 = vpop.f32.mrf.mxu3  ;;  %435 = vst [vmem:[#allocation8 + $0x40] sm:$0xff] %v419_v5  ;;  %v423_v9 = vsel %vm407_vm3, %v327_v28, %v539_v3  ;;  %v532_v10 = vadd.f32 -1.0, %v602_v4  ;;  %607 = vpow2.f32 %v351_v0  ;;  %v325_v11 = vadd.f32 %v737_v16, %v245_v7  ;;  %v227_v12 = vpop.f32.mrf.mxu0 }
  0xc2   :  { %v237_v13 = vpop.f32.mrf.mxu1  ;;  %439 = vst [vmem:[#allocation8 + $0x60] sm:$0xff] %v423_v9  ;;  %v412_v14 = vsel %vm396_vm4, %v744_v31, %v528_v6  ;;  %609 = vpow2.f32 %v359_v1  ;;  %v329_v15 = vadd.f32 %v737_v16, %v255_v8  ;;  %v775_v17 = vadd.f32 %v737_v16, %v227_v12 }
  0xc3   :  { %428 = vst [vmem:[#allocation8 + $0x8] sm:$0xff] %v412_v14  ;;  %v416_v18 = vsel %vm400_vm5, %v747_v32, %v532_v10  ;;  %v341_v19 = vmin.f32 %v325_v11, 0.0  ;;  %v322_v20 = vadd.f32 %v737_v16, %v237_v13  ;;  %vm405_vm10 = vcmp.gt.f32.partialorder %v325_v11, 0.0 }
  0xc4   :  { %432 = vst [vmem:[#allocation8 + $0x28] sm:$0xff] %v416_v18  ;;  %v345_v21 = vmin.f32 %v329_v15, 0.0  ;;  %v334_v22 = vmin.f32 %v775_v17, 0.0  ;;  %vm409_vm11 = vcmp.gt.f32.partialorder %v329_v15, 0.0  ;;  %vm398_vm12 = vcmp.gt.f32.partialorder %v775_v17, 0.0 }
  0xc5   :  { %v604_v23 = vpop.eup %603  ;;  %v367_v24 = vmul.f32 1.442695, %v341_v19  ;;  %v338_v25 = vmin.f32 %v322_v20, 0.0  ;;  %vm402_vm13 = vcmp.gt.f32.partialorder %v322_v20, 0.0 }
  0xc6   :  { %v606_v26 = vpop.eup %605  ;;  %v536_v27 = vadd.f32 -1.0, %v604_v23  ;;  %v375_v28 = vmul.f32 1.442695, %v345_v21  ;;  %v353_v29 = vmul.f32 1.442695, %v334_v22 }
  0xc7   :  { %v608_v30 = vpop.eup %607  ;;  %v540_v31 = vadd.f32 -1.0, %v606_v26  ;;  %611 = vpow2.f32 %v367_v24  ;;  %v361_v32 = vmul.f32 1.442695, %v338_v25 }
  0xc8   :  { %v610_v33 = vpop.eup %609  ;;  %v420_v34 = vsel %vm404_vm6, %v752_v48, %v536_v27  ;;  %v529_v35 = vadd.f32 -1.0, %v608_v30  ;;  %613 = vpow2.f32 %v375_v28  ;;  %v247_v36 = vpop.f32.mrf.mxu2 }
  0xc9   :  { %v257_v37 = vpop.f32.mrf.mxu3  ;;  %436 = vst [vmem:[#allocation8 + $0x48] sm:$0xff] %v420_v34  ;;  %v424_v38 = vsel %vm408_vm7, %v755_v49, %v540_v31  ;;  %v533_v39 = vadd.f32 -1.0, %v610_v33  ;;  %615 = vpow2.f32 %v353_v29  ;;  %v326_v40 = vadd.f32 %v737_v16, %v247_v36 }
  0xca   :  { %440 = vst [vmem:[#allocation8 + $0x68] sm:$0xff] %v424_v38  ;;  %v413_v41 = vsel %vm397_vm8, %v758_v53, %v529_v35  ;;  %617 = vpow2.f32 %v361_v32  ;;  %v330_v42 = vadd.f32 %v737_v16, %v257_v37 }
  0xcb   :  { %429 = vst [vmem:[#allocation8 + $0x10] sm:$0xff] %v413_v41  ;;  %v417_v43 = vsel %vm401_vm9, %v761_v54, %v533_v39  ;;  %v342_v44 = vmin.f32 %v326_v40, 0.0  ;;  %vm406_vm14 = vcmp.gt.f32.partialorder %v326_v40, 0.0 }
  0xcc   :  { %433 = vst [vmem:[#allocation8 + $0x30] sm:$0xff] %v417_v43  ;;  %v346_v45 = vmin.f32 %v330_v42, 0.0  ;;  %vm410_vm15 = vcmp.gt.f32.partialorder %v330_v42, 0.0 }
  0xcd   :  { %v612_v46 = vpop.eup %611  ;;  %v369_v47 = vmul.f32 1.442695, %v342_v44 }
  0xce   :  { %v614_v48 = vpop.eup %613  ;;  %v537_v49 = vadd.f32 -1.0, %v612_v46  ;;  %v377_v50 = vmul.f32 1.442695, %v346_v45 }
  0xcf   :  { %v616_v51 = vpop.eup %615  ;;  %v541_v52 = vadd.f32 -1.0, %v614_v48  ;;  %619 = vpow2.f32 %v369_v47 }
  0xd0   :  { %v618_v53 = vpop.eup %617  ;;  %v421_v55 = vsel %vm405_vm10, %v325_v11, %v537_v49  ;;  %v530_v56 = vadd.f32 -1.0, %v616_v51  ;;  %621 = vpow2.f32 %v377_v50 }
  0xd1   :  { %437 = vst [vmem:[#allocation8 + $0x50] sm:$0xff] %v421_v55  ;;  %v425_v16 = vsel %vm409_vm11, %v329_v15, %v541_v52  ;;  %v534_v54 = vadd.f32 -1.0, %v618_v53 }
  0xd2   :  { %441 = vst [vmem:[#allocation8 + $0x70] sm:$0xff] %v425_v16  ;;  %v414_v57 = vsel %vm398_vm12, %v775_v17, %v530_v56 }
  0xd3   :  { %430 = vst [vmem:[#allocation8 + $0x18] sm:$0xff] %v414_v57  ;;  %v418_v58 = vsel %vm402_vm13, %v322_v20, %v534_v54 }
  0xd4   :  { %434 = vst [vmem:[#allocation8 + $0x38] sm:$0xff] %v418_v58 }
  0xd5   :  { %v620_v59 = vpop.eup %619 }
  0xd6   :  { %v622_v60 = vpop.eup %621  ;;  %v538_v61 = vadd.f32 -1.0, %v620_v59 }
  0xd7   :  { %v542_v62 = vadd.f32 -1.0, %v622_v60 }
  0xd8   :  { %v422_v63 = vsel %vm406_vm14, %v326_v40, %v538_v61 }
  0xd9   :  { %438 = vst [vmem:[#allocation8 + $0x58] sm:$0xff] %v422_v63  ;;  %v426_v0 = vsel %vm410_vm15, %v330_v42, %v542_v62 }
  0xda   :  { %442 = vst [vmem:[#allocation8 + $0x78] sm:$0xff] %v426_v0 }
  0xdb   :  { %455 = dma.vmem_to_hbm [thread:$0]  %s448_s24, 2048, %s450_s27, [#allocation5], %s706_s28, %s706_s28, %s707_s29  }
  0xdc   :  { %699 = dma.done.wait [#allocation5], 2048  }
  0xdd   :  { %700 = vsyncadd [#allocation5], 4294965248 }
  0xde   :  { %460 = vsyncpa [#allocation4], 1 }
  0xdf   :  { %461 = vsyncpa [#allocation7], 1 }
  0xe0   :  { %462 = vsyncpa [#allocation5], 1 }

</bundles_post_ra>
